<compile_context>
chip_gen: v7x
topology: tpu7x:2x2x1
jax: 0.10.0
libtpu: 0.0.40
codegen_flags: <defaults>
</compile_context>

<pallas_src>
import functools

import jax
import jax.numpy as jnp
from jax.experimental import pallas as pl
from jax.experimental.pallas import tpu as pltpu

NEG_BIG = -1e9   # mask constant; off-edge exp underflows to exactly 0.0 in f32


# ---------------------------------------------------------------------------
# Fused GAT + semantic-attention kernel
#   grid = (dst_tiles, num_metapaths)   (metapath axis innermost / "arbitrary")
# ---------------------------------------------------------------------------
def _han_fused_kernel(adj_ref, feat_ref, elt_ref, er_ref, b_ref,
                      w1_ref, b1_ref, w2_ref, out_ref, mx_scr, den_scr,
                      *, num_heads, out_feats, num_meta, neg_slope,
                      use_bf16_mxu, approx_recip):
    m = pl.program_id(1)                         # metapath index (inner axis)

    def mxu(a, b):
        # bf16 operands (f32 accumulation) for MXU throughput on v5e/v6e/v7x.
        if use_bf16_mxu:
            a = a.astype(jnp.bfloat16)
            b = b.astype(jnp.bfloat16)
        return jnp.dot(a, b, preferred_element_type=jnp.float32)

    def recip(x):
        # approx=True -> EUP vrcp slot (free co-issue); exact when approx=False.
        return pl.reciprocal(x, approx=approx_recip)

    mask = adj_ref[0] != 0                       # (T, N) bool straight from i8
    feat = feat_ref[0]                           # (N, D)   precomputed h @ W
    el_t = elt_ref[0]                            # (H, N)   precomputed el^T
    er = er_ref[0]                               # (T, H)   precomputed er rows
    bias = b_ref[0]                              # (1, D)

    heads = []
    # TODO(synk): use lax.fori_loop + pl.ds slices when num_heads >= 4.
    for hd in range(num_heads):
        # logits[dst, src] = leaky_relu(el[src, h] + er[dst, h])
        logits = er[:, hd:hd + 1] + el_t[hd:hd + 1, :]       # (T, N) VPU bcast
        logits = jnp.where(logits >= 0, logits, neg_slope * logits)
        masked = jnp.where(mask, logits, NEG_BIG)
        mmax = jnp.max(masked, axis=1, keepdims=True)        # (T, 1)
        # off-edge entries: exp(NEG_BIG - mmax) underflows to exact 0.0, so no
        # second (T, N) select is needed (VALU is the critical slot here).
        p = jnp.exp(masked - mmax)
        inv_den = recip(jnp.sum(p, axis=1, keepdims=True))   # (T, 1)
        feat_h = feat[:, hd * out_feats:(hd + 1) * out_feats]  # (N, F_out)
        # fold the softmax normalization into the matmul epilogue
        heads.append(mxu(p, feat_h) * inv_den)               # (T, F_out) f32

    # register-level head concat -> one lane-dense (T, D) value
    z_m = (jnp.concatenate(heads, axis=1) if num_heads > 1 else heads[0]) + bias
    z_m = jnp.where(z_m > 0, z_m, jnp.exp(jnp.minimum(z_m, 0.0)) - 1.0)  # ELU

    # per-node semantic-attention score for this metapath
    hid = jnp.tanh(mxu(z_m, w1_ref[...]) + b1_ref[...])      # (T, Hs)
    score = jnp.sum(hid * w2_ref[...], axis=1, keepdims=True)  # (T, 1)

    # online softmax over the metapath axis, accumulated directly in out_ref
    # (the out block index is constant along m -> VMEM-resident accumulator).
    @pl.when(m == 0)
    def _():
        mx_scr[...] = score
        den_scr[...] = jnp.ones_like(score)
        out_ref[...] = z_m

    @pl.when(m > 0)
    def _():
        mx_new = jnp.maximum(mx_scr[...], score)
        a = jnp.exp(mx_scr[...] - mx_new)
        p_m = jnp.exp(score - mx_new)
        den_scr[...] = a * den_scr[...] + p_m
        out_ref[...] = a * out_ref[...] + p_m * z_m
        mx_scr[...] = mx_new

    @pl.when(m == num_meta - 1)
    def _():
        out_ref[...] = out_ref[...] * recip(den_scr[...])


# ---------------------------------------------------------------------------
# Wrapper
# ---------------------------------------------------------------------------
def _round_up(x, m):
    return (x + m - 1) // m * m


def _pick_dst_tile(n, max_tile):
    """Return (t_dst, n_pad): an 8-aligned dst tile and a padded node count
    with n_pad % t_dst == 0 (never a full-N fallback at large N)."""
    if n <= max_tile:
        return n, n                       # single tile; block == full dim
    t = max(8, (max_tile // 8) * 8)       # keep (8, 128) BlockSpec rule happy
    return t, _round_up(n, t)


def han_layer_forward(adj, h, params, *, use_bf16_mxu=False, approx_recip=True,
                      max_dst_tile=256, use_core_parallel=False,
                      vmem_limit_bytes=48 * 1024 * 1024):
    """adj: (M, N, N), adj[m, dst, src] != 0 => edge src->dst (self-loops
    expected, like DGL).  h: (N, F_in).  Returns (N, heads*out_size).

    Tuning: max_dst_tile 256 is safe on v7x (64 MiB VMEM); raise to 512+ on
    v5e/v6e (128 MiB) and bump vmem_limit_bytes.  use_core_parallel=True uses
    pltpu.CORE_PARALLEL on the dst axis to split across v7x's 2 TensorCores.
    use_bf16_mxu=True / approx_recip=True are the recommended prod settings."""
    M, N, _ = adj.shape
    W = params["gat_w"]        # (M, F_in, D)
    attn_l = params["attn_l"]  # (M, H, F_out)
    attn_r = params["attn_r"]  # (M, H, F_out)
    B = params["gat_bias"]     # (M, 1, D)
    W1 = params["sem_w1"]      # (D, Hs)
    b1 = params["sem_b1"]      # (1, Hs)
    w2 = params["sem_w2"]      # (1, Hs)
    H_heads, out_feats = attn_l.shape[1], attn_l.shape[2]
    D = W.shape[2]
    Hs = W1.shape[1]
    assert D == H_heads * out_feats

    if adj.dtype != jnp.int8:                 # ship a narrow mask
        adj = (adj != 0).astype(jnp.int8)

    t_dst, n_pad = _pick_dst_tile(N, max_dst_tile)
    n_tiles = n_pad // t_dst

    # Ragged N: zero-pad features, zero-pad adjacency, give padded dst rows a
    # self-loop so their edge-softmax denominator stays > 0 (rows sliced off).
    if n_pad != N:
        h = jnp.pad(h, ((0, n_pad - N), (0, 0)))
        adj = jnp.pad(adj, ((0, 0), (0, n_pad - N), (0, n_pad - N)))
        pad_idx = jnp.arange(N, n_pad)
        adj = adj.at[:, pad_idx, pad_idx].set(1)

    # Hoist all metapath-only work out of the dst-tile loop (plain XLA einsums;
    # they depend only on m, not on the dst tile).
    feat_all = jnp.einsum('nf,mfd->mnd', h, W)                   # (M, Np, D)
    feat_h4 = feat_all.reshape(M, n_pad, H_heads, out_feats)
    el_t = jnp.einsum('mnhf,mhf->mhn', feat_h4, attn_l)          # (M, H, Np)
    er = jnp.einsum('mnhf,mhf->mnh', feat_h4, attn_r)            # (M, Np, H)
    feat_stream = feat_all.astype(jnp.bfloat16) if use_bf16_mxu else feat_all

    kernel = functools.partial(
        _han_fused_kernel, num_heads=H_heads, out_feats=out_feats,
        num_meta=M, neg_slope=0.2, use_bf16_mxu=use_bf16_mxu,
        approx_recip=approx_recip)

    if use_core_parallel:       # v7x: actually split dst tiles across 2 TCs
        dims = (pltpu.CORE_PARALLEL, pltpu.ARBITRARY)
    else:
        dims = ("parallel", "arbitrary")

    out = pl.pallas_call(
        kernel,
        out_shape=jax.ShapeDtypeStruct((n_pad, D), jnp.float32),
        grid_spec=pltpu.PrefetchScalarGridSpec(
            num_scalar_prefetch=0,
            grid=(n_tiles, M),                       # metapath axis innermost
            in_specs=[
                pl.BlockSpec((1, t_dst, n_pad), lambda j, m: (m, j, 0)),    # adj i8
                pl.BlockSpec((1, n_pad, D), lambda j, m: (m, 0, 0)),        # feat
                pl.BlockSpec((1, H_heads, n_pad), lambda j, m: (m, 0, 0)),  # el^T
                pl.BlockSpec((1, t_dst, H_heads), lambda j, m: (m, j, 0)),  # er
                pl.BlockSpec((1, 1, D), lambda j, m: (m, 0, 0)),            # bias
                pl.BlockSpec((D, Hs), lambda j, m: (0, 0)),                 # sem W1
                pl.BlockSpec((1, Hs), lambda j, m: (0, 0)),                 # sem b1
                pl.BlockSpec((1, Hs), lambda j, m: (0, 0)),                 # sem w2
            ],
            out_specs=pl.BlockSpec((t_dst, D), lambda j, m: (j, 0)),
            scratch_shapes=[
                pltpu.VMEM((t_dst, 1), jnp.float32),   # semantic running max
                pltpu.VMEM((t_dst, 1), jnp.float32),   # semantic running denom
            ],
        ),
        compiler_params=pltpu.CompilerParams(
            dimension_semantics=dims,
            vmem_limit_bytes=vmem_limit_bytes),
    )(adj, feat_stream, el_t, er, B, W1, b1, w2)

    return out[:N] if n_pad != N else out


# ---------------------------------------------------------------------------
# Pure-JAX reference (same math, used for the correctness check)
# ---------------------------------------------------------------------------
def han_layer_reference(adj, h, params):
    M, N, _ = adj.shape
    adjf = (adj != 0).astype(jnp.float32)
    H_heads, F = params["attn_l"].shape[1], params["attn_l"].shape[2]
    outs = []
    for m in range(M):
        feat = h @ params["gat_w"][m]                        # (N, D)
        fh = feat.reshape(N, H_heads, F)
        el = jnp.einsum('nhf,hf->nh', fh, params["attn_l"][m])
        er = jnp.einsum('nhf,hf->nh', fh, params["attn_r"][m])
        heads = []
        for hd in range(H_heads):
            logits = er[:, hd][:, None] + el[:, hd][None, :]
            logits = jnp.where(logits >= 0, logits, 0.2 * logits)
            masked = jnp.where(adjf[m] > 0, logits, NEG_BIG)
            mm = masked.max(axis=1, keepdims=True)
            p = jnp.exp(masked - mm) * adjf[m]
            alpha = p / p.sum(axis=1, keepdims=True)
            rst = alpha @ feat[:, hd * F:(hd + 1) * F]
            rst = rst + params["gat_bias"][m][0, hd * F:(hd + 1) * F]
            rst = jnp.where(rst > 0, rst, jnp.exp(jnp.minimum(rst, 0.0)) - 1.0)
            heads.append(rst)
        outs.append(jnp.concatenate(heads, axis=1))
    z = jnp.stack(outs, axis=1)                              # (N, M, D)
    w = jnp.tanh(z @ params["sem_w1"] + params["sem_b1"][0]) @ params["sem_w2"].T
    beta = jax.nn.softmax(w, axis=1)
    return (beta * z).sum(axis=1)


# ---------------------------------------------------------------------------
if __name__ == "__main__":
    # HANLayer(num_meta_paths=3, in_size=16, out_size=8, layer_num_heads=2,
    # dropout=0.0), N=20 nodes (ragged on purpose to exercise padding/tiling).
    M, N, F_in, out_size, heads, Hs = 3, 20, 16, 8, 2, 64
    D = out_size * heads

    key = jax.random.PRNGKey(0)
    keys = jax.random.split(key, 9)

    h = jax.random.normal(keys[0], (N, F_in), jnp.float32)

    # dense adjacency per metapath, self-loops so every node has an in-edge
    bern = (jax.random.uniform(keys[1], (M, N, N)) < 0.3).astype(jnp.float32)
    eye = jnp.broadcast_to(jnp.eye(N, dtype=jnp.float32), (M, N, N))
    adj = jnp.maximum(bern, eye)

    params = dict(
        gat_w=0.1 * jax.random.normal(keys[2], (M, F_in, D), jnp.float32),
        attn_l=0.1 * jax.random.normal(keys[3], (M, heads, out_size), jnp.float32),
        attn_r=0.1 * jax.random.normal(keys[4], (M, heads, out_size), jnp.float32),
        gat_bias=0.1 * jax.random.normal(keys[5], (M, 1, D), jnp.float32),
        sem_w1=0.1 * jax.random.normal(keys[6], (D, Hs), jnp.float32),
        sem_b1=0.1 * jax.random.normal(keys[7], (1, Hs), jnp.float32),
        sem_w2=0.1 * jax.random.normal(keys[8], (1, Hs), jnp.float32))

    # max_dst_tile=8 exercises multi-tile + ragged-N padding (N=20 -> N_pad=24).
    # use_bf16_mxu / approx_recip are the recommended prod settings on
    # v6e/v7x but are kept off here so the f32 reference check stays tight.
    out = han_layer_forward(adj.astype(jnp.int8), h, params,
                            use_bf16_mxu=False, approx_recip=False,
                            max_dst_tile=8)
    out = jax.block_until_ready(out)

    ref = jax.block_until_ready(han_layer_reference(adj, h, params))

    assert out.shape == (N, D), out.shape
    err = float(jnp.max(jnp.abs(out - ref)))
    assert jnp.allclose(out, ref, atol=1e-4, rtol=1e-4), err

    print("KERNEL_OK")
</pallas_src>

<mosaic_0001>
module attributes {stable_mosaic.version = 11 : i64} {
  func.func @_han_fused_kernel(%arg0: i32, %arg1: i32, %arg2: memref<1x8x24xi8, #tpu.memory_space<vmem>>, %arg3: memref<1x24x16xf32, #tpu.memory_space<vmem>>, %arg4: memref<1x2x24xf32, #tpu.memory_space<vmem>>, %arg5: memref<1x8x2xf32, #tpu.memory_space<vmem>>, %arg6: memref<1x1x16xf32, #tpu.memory_space<vmem>>, %arg7: memref<16x64xf32, #tpu.memory_space<vmem>>, %arg8: memref<1x64xf32, #tpu.memory_space<vmem>>, %arg9: memref<1x64xf32, #tpu.memory_space<vmem>>, %arg10: memref<8x16xf32, #tpu.memory_space<vmem>>, %arg11: memref<8x1xf32, #tpu.memory_space<vmem>>, %arg12: memref<8x1xf32, #tpu.memory_space<vmem>>) attributes {dimension_semantics = [#tpu.dimension_semantics<parallel>, #tpu.dimension_semantics<arbitrary>], iteration_bounds = array<i64: 3, 3>, scalar_prefetch = 0 : i64, scratch_operands = 2 : i64, tpu.core_type = #tpu.core_type<tc>, window_params = [{transform_indices = @transform_0, window_bounds = array<i64: 1, 8, 24>}, {transform_indices = @transform_1, window_bounds = array<i64: 1, 24, 16>}, {transform_indices = @transform_2, window_bounds = array<i64: 1, 2, 24>}, {transform_indices = @transform_3, window_bounds = array<i64: 1, 8, 2>}, {transform_indices = @transform_4, window_bounds = array<i64: 1, 1, 16>}, {pipeline_mode = #tpu.pipeline_mode<synchronous>, transform_indices = @transform_5, window_bounds = array<i64: 16, 64>}, {pipeline_mode = #tpu.pipeline_mode<synchronous>, transform_indices = @transform_6, window_bounds = array<i64: 1, 64>}, {pipeline_mode = #tpu.pipeline_mode<synchronous>, transform_indices = @transform_7, window_bounds = array<i64: 1, 64>}, {transform_indices = @transform_8, window_bounds = array<i64: 8, 16>}]} {
    %c0 = arith.constant 0 : index
    %c0_0 = arith.constant 0 : index
    %c0_1 = arith.constant 0 : index
    %0 = vector.load %arg2[%c0, %c0_0, %c0_1] : memref<1x8x24xi8, #tpu.memory_space<vmem>>, vector<1x8x24xi8>
    %1 = vector.shape_cast %0 : vector<1x8x24xi8> to vector<8x24xi8>
    %c0_i8 = arith.constant 0 : i8
    %2 = vector.broadcast %c0_i8 : i8 to vector<8x24xi8>
    %3 = arith.cmpi ne, %1, %2 : vector<8x24xi8>
    %c0_2 = arith.constant 0 : index
    %c0_3 = arith.constant 0 : index
    %c0_4 = arith.constant 0 : index
    %4 = vector.load %arg3[%c0_2, %c0_3, %c0_4] : memref<1x24x16xf32, #tpu.memory_space<vmem>>, vector<1x24x16xf32>
    %5 = vector.shape_cast %4 : vector<1x24x16xf32> to vector<24x16xf32>
    %c0_5 = arith.constant 0 : index
    %c0_6 = arith.constant 0 : index
    %c0_7 = arith.constant 0 : index
    %6 = vector.load %arg4[%c0_5, %c0_6, %c0_7] : memref<1x2x24xf32, #tpu.memory_space<vmem>>, vector<1x2x24xf32>
    %7 = vector.shape_cast %6 : vector<1x2x24xf32> to vector<2x24xf32>
    %c0_8 = arith.constant 0 : index
    %c0_9 = arith.constant 0 : index
    %c0_10 = arith.constant 0 : index
    %8 = vector.load %arg5[%c0_8, %c0_9, %c0_10] : memref<1x8x2xf32, #tpu.memory_space<vmem>>, vector<1x8x2xf32>
    %9 = vector.shape_cast %8 : vector<1x8x2xf32> to vector<8x2xf32>
    %c0_11 = arith.constant 0 : index
    %c0_12 = arith.constant 0 : index
    %c0_13 = arith.constant 0 : index
    %10 = vector.load %arg6[%c0_11, %c0_12, %c0_13] : memref<1x1x16xf32, #tpu.memory_space<vmem>>, vector<1x1x16xf32>
    %11 = vector.shape_cast %10 : vector<1x1x16xf32> to vector<1x16xf32>
    %12 = vector.extract_strided_slice %9 {offsets = [0, 0], sizes = [8, 1], strides = [1, 1]} : vector<8x2xf32> to vector<8x1xf32>
    %13 = vector.extract_strided_slice %7 {offsets = [0, 0], sizes = [1, 24], strides = [1, 1]} : vector<2x24xf32> to vector<1x24xf32>
    %14 = vector.broadcast %12 : vector<8x1xf32> to vector<8x24xf32>
    %15 = vector.broadcast %13 : vector<1x24xf32> to vector<8x24xf32>
    %16 = arith.addf %14, %15 : vector<8x24xf32>
    %cst = arith.constant 0.000000e+00 : f32
    %17 = vector.broadcast %cst : f32 to vector<8x24xf32>
    %18 = arith.cmpf oge, %16, %17 : vector<8x24xf32>
    %cst_14 = arith.constant 2.000000e-01 : f32
    %19 = vector.broadcast %cst_14 : f32 to vector<8x24xf32>
    %20 = arith.mulf %19, %16 : vector<8x24xf32>
    %21 = arith.select %18, %16, %20 : vector<8x24xi1>, vector<8x24xf32>
    %cst_15 = arith.constant -1.000000e+09 : f32
    %22 = vector.broadcast %cst_15 : f32 to vector<8x24xf32>
    %23 = arith.select %3, %21, %22 : vector<8x24xi1>, vector<8x24xf32>
    %cst_16 = arith.constant dense<0xFF800000> : vector<8xf32>
    %24 = vector.multi_reduction <maximumf>, %23, %cst_16 [1] : vector<8x24xf32> to vector<8xf32>
    %25 = vector.shape_cast %24 : vector<8xf32> to vector<8x1xf32>
    %26 = vector.broadcast %25 : vector<8x1xf32> to vector<8x24xf32>
    %27 = arith.subf %23, %26 : vector<8x24xf32>
    %28 = math.exp %27 : vector<8x24xf32>
    %cst_17 = arith.constant dense<0.000000e+00> : vector<8xf32>
    %29 = vector.multi_reduction <add>, %28, %cst_17 [1] : vector<8x24xf32> to vector<8xf32>
    %30 = vector.shape_cast %29 : vector<8xf32> to vector<8x1xf32>
    %31 = tpu.reciprocal %30 : vector<8x1xf32> -> vector<8x1xf32>
    %32 = vector.extract_strided_slice %5 {offsets = [0, 0], sizes = [24, 8], strides = [1, 1]} : vector<24x16xf32> to vector<24x8xf32>
    %cst_18 = arith.constant dense<0.000000e+00> : vector<8x8xf32>
    %33 = tpu.matmul %28, %32, %cst_18 {dimension_numbers = #tpu.dot_dimension_numbers<[1], [0], [0], [1], [0, 0, 1, 1], [], []>} : vector<8x24xf32>, vector<24x8xf32>, vector<8x8xf32> -> vector<8x8xf32>
    %34 = vector.broadcast %31 : vector<8x1xf32> to vector<8x8xf32>
    %35 = arith.mulf %33, %34 : vector<8x8xf32>
    %36 = vector.extract_strided_slice %9 {offsets = [0, 1], sizes = [8, 1], strides = [1, 1]} : vector<8x2xf32> to vector<8x1xf32>
    %37 = vector.extract_strided_slice %7 {offsets = [1, 0], sizes = [1, 24], strides = [1, 1]} : vector<2x24xf32> to vector<1x24xf32>
    %38 = vector.broadcast %36 : vector<8x1xf32> to vector<8x24xf32>
    %39 = vector.broadcast %37 : vector<1x24xf32> to vector<8x24xf32>
    %40 = arith.addf %38, %39 : vector<8x24xf32>
    %cst_19 = arith.constant 0.000000e+00 : f32
    %41 = vector.broadcast %cst_19 : f32 to vector<8x24xf32>
    %42 = arith.cmpf oge, %40, %41 : vector<8x24xf32>
    %cst_20 = arith.constant 2.000000e-01 : f32
    %43 = vector.broadcast %cst_20 : f32 to vector<8x24xf32>
    %44 = arith.mulf %43, %40 : vector<8x24xf32>
    %45 = arith.select %42, %40, %44 : vector<8x24xi1>, vector<8x24xf32>
    %cst_21 = arith.constant -1.000000e+09 : f32
    %46 = vector.broadcast %cst_21 : f32 to vector<8x24xf32>
    %47 = arith.select %3, %45, %46 : vector<8x24xi1>, vector<8x24xf32>
    %cst_22 = arith.constant dense<0xFF800000> : vector<8xf32>
    %48 = vector.multi_reduction <maximumf>, %47, %cst_22 [1] : vector<8x24xf32> to vector<8xf32>
    %49 = vector.shape_cast %48 : vector<8xf32> to vector<8x1xf32>
    %50 = vector.broadcast %49 : vector<8x1xf32> to vector<8x24xf32>
    %51 = arith.subf %47, %50 : vector<8x24xf32>
    %52 = math.exp %51 : vector<8x24xf32>
    %cst_23 = arith.constant dense<0.000000e+00> : vector<8xf32>
    %53 = vector.multi_reduction <add>, %52, %cst_23 [1] : vector<8x24xf32> to vector<8xf32>
    %54 = vector.shape_cast %53 : vector<8xf32> to vector<8x1xf32>
    %55 = tpu.reciprocal %54 : vector<8x1xf32> -> vector<8x1xf32>
    %56 = vector.extract_strided_slice %5 {offsets = [0, 8], sizes = [24, 8], strides = [1, 1]} : vector<24x16xf32> to vector<24x8xf32>
    %cst_24 = arith.constant dense<0.000000e+00> : vector<8x8xf32>
    %57 = tpu.matmul %52, %56, %cst_24 {dimension_numbers = #tpu.dot_dimension_numbers<[1], [0], [0], [1], [0, 0, 1, 1], [], []>} : vector<8x24xf32>, vector<24x8xf32>, vector<8x8xf32> -> vector<8x8xf32>
    %58 = vector.broadcast %55 : vector<8x1xf32> to vector<8x8xf32>
    %59 = arith.mulf %57, %58 : vector<8x8xf32>
    %60 = tpu.concatenate %35, %59 in 1 : vector<8x8xf32>, vector<8x8xf32> -> vector<8x16xf32>
    %61 = vector.broadcast %11 : vector<1x16xf32> to vector<8x16xf32>
    %62 = arith.addf %60, %61 : vector<8x16xf32>
    %cst_25 = arith.constant 0.000000e+00 : f32
    %63 = vector.broadcast %cst_25 : f32 to vector<8x16xf32>
    %64 = arith.cmpf ogt, %62, %63 : vector<8x16xf32>
    %cst_26 = arith.constant 0.000000e+00 : f32
    %65 = vector.broadcast %cst_26 : f32 to vector<8x16xf32>
    %66 = arith.minimumf %62, %65 : vector<8x16xf32>
    %67 = math.exp %66 : vector<8x16xf32>
    %cst_27 = arith.constant 1.000000e+00 : f32
    %68 = vector.broadcast %cst_27 : f32 to vector<8x16xf32>
    %69 = arith.subf %67, %68 : vector<8x16xf32>
    %70 = arith.select %64, %62, %69 : vector<8x16xi1>, vector<8x16xf32>
    %c0_28 = arith.constant 0 : index
    %c0_29 = arith.constant 0 : index
    %71 = vector.load %arg7[%c0_28, %c0_29] : memref<16x64xf32, #tpu.memory_space<vmem>>, vector<16x64xf32>
    %cst_30 = arith.constant dense<0.000000e+00> : vector<8x64xf32>
    %72 = tpu.matmul %70, %71, %cst_30 {dimension_numbers = #tpu.dot_dimension_numbers<[1], [0], [0], [1], [0, 0, 1, 1], [], []>} : vector<8x16xf32>, vector<16x64xf32>, vector<8x64xf32> -> vector<8x64xf32>
    %c0_31 = arith.constant 0 : index
    %c0_32 = arith.constant 0 : index
    %73 = vector.load %arg8[%c0_31, %c0_32] : memref<1x64xf32, #tpu.memory_space<vmem>>, vector<1x64xf32>
    %74 = vector.broadcast %73 : vector<1x64xf32> to vector<8x64xf32>
    %75 = arith.addf %72, %74 : vector<8x64xf32>
    %76 = math.tanh %75 : vector<8x64xf32>
    %c0_33 = arith.constant 0 : index
    %c0_34 = arith.constant 0 : index
    %77 = vector.load %arg9[%c0_33, %c0_34] : memref<1x64xf32, #tpu.memory_space<vmem>>, vector<1x64xf32>
    %78 = vector.broadcast %77 : vector<1x64xf32> to vector<8x64xf32>
    %79 = arith.mulf %76, %78 : vector<8x64xf32>
    %cst_35 = arith.constant dense<0.000000e+00> : vector<8xf32>
    %80 = vector.multi_reduction <add>, %79, %cst_35 [1] : vector<8x64xf32> to vector<8xf32>
    %81 = vector.shape_cast %80 : vector<8xf32> to vector<8x1xf32>
    %c0_i32 = arith.constant 0 : i32
    %82 = arith.cmpi eq, %arg1, %c0_i32 : i32
    %83 = arith.extui %82 : i1 to i32
    %c0_i32_36 = arith.constant 0 : i32
    %84 = arith.cmpi ne, %83, %c0_i32_36 : i32
    scf.if %84 {
      %c0_40 = arith.constant 0 : index
      %c0_41 = arith.constant 0 : index
      %91 = vector.load %arg11[%c0_40, %c0_41] : memref<8x1xf32, #tpu.memory_space<vmem>>, vector<8x1xf32>
      tpu.vector_store %arg11[%c0_40, %c0_41], %81 {strides = array<i32>} : memref<8x1xf32, #tpu.memory_space<vmem>>, vector<8x1xf32>,
      %cst_42 = arith.constant 1.000000e+00 : f32
      %92 = vector.broadcast %cst_42 : f32 to vector<8x1xf32>
      %c0_43 = arith.constant 0 : index
      %c0_44 = arith.constant 0 : index
      %93 = vector.load %arg12[%c0_43, %c0_44] : memref<8x1xf32, #tpu.memory_space<vmem>>, vector<8x1xf32>
      tpu.vector_store %arg12[%c0_43, %c0_44], %92 {strides = array<i32>} : memref<8x1xf32, #tpu.memory_space<vmem>>, vector<8x1xf32>,
      %c0_45 = arith.constant 0 : index
      %c0_46 = arith.constant 0 : index
      %94 = vector.load %arg10[%c0_45, %c0_46] : memref<8x16xf32, #tpu.memory_space<vmem>>, vector<8x16xf32>
      tpu.vector_store %arg10[%c0_45, %c0_46], %70 {strides = array<i32>} : memref<8x16xf32, #tpu.memory_space<vmem>>, vector<8x16xf32>,
    } else {
    }
    %c0_i32_37 = arith.constant 0 : i32
    %85 = arith.cmpi sgt, %arg1, %c0_i32_37 : i32
    %86 = arith.extui %85 : i1 to i32
    %c0_i32_38 = arith.constant 0 : i32
    %87 = arith.cmpi ne, %86, %c0_i32_38 : i32
    scf.if %87 {
      %c0_40 = arith.constant 0 : index
      %c0_41 = arith.constant 0 : index
      %91 = vector.load %arg11[%c0_40, %c0_41] : memref<8x1xf32, #tpu.memory_space<vmem>>, vector<8x1xf32>
      %92 = arith.maximumf %91, %81 : vector<8x1xf32>
      %c0_42 = arith.constant 0 : index
      %c0_43 = arith.constant 0 : index
      %93 = vector.load %arg11[%c0_42, %c0_43] : memref<8x1xf32, #tpu.memory_space<vmem>>, vector<8x1xf32>
      %94 = arith.subf %93, %92 : vector<8x1xf32>
      %95 = math.exp %94 : vector<8x1xf32>
      %96 = arith.subf %81, %92 : vector<8x1xf32>
      %97 = math.exp %96 : vector<8x1xf32>
      %c0_44 = arith.constant 0 : index
      %c0_45 = arith.constant 0 : index
      %98 = vector.load %arg12[%c0_44, %c0_45] : memref<8x1xf32, #tpu.memory_space<vmem>>, vector<8x1xf32>
      %99 = arith.mulf %95, %98 : vector<8x1xf32>
      %100 = arith.addf %99, %97 : vector<8x1xf32>
      %c0_46 = arith.constant 0 : index
      %c0_47 = arith.constant 0 : index
      %101 = vector.load %arg12[%c0_46, %c0_47] : memref<8x1xf32, #tpu.memory_space<vmem>>, vector<8x1xf32>
      tpu.vector_store %arg12[%c0_46, %c0_47], %100 {strides = array<i32>} : memref<8x1xf32, #tpu.memory_space<vmem>>, vector<8x1xf32>,
      %c0_48 = arith.constant 0 : index
      %c0_49 = arith.constant 0 : index
      %102 = vector.load %arg10[%c0_48, %c0_49] : memref<8x16xf32, #tpu.memory_space<vmem>>, vector<8x16xf32>
      %103 = vector.broadcast %95 : vector<8x1xf32> to vector<8x16xf32>
      %104 = arith.mulf %103, %102 : vector<8x16xf32>
      %105 = vector.broadcast %97 : vector<8x1xf32> to vector<8x16xf32>
      %106 = arith.mulf %105, %70 : vector<8x16xf32>
      %107 = arith.addf %104, %106 : vector<8x16xf32>
      %c0_50 = arith.constant 0 : index
      %c0_51 = arith.constant 0 : index
      %108 = vector.load %arg10[%c0_50, %c0_51] : memref<8x16xf32, #tpu.memory_space<vmem>>, vector<8x16xf32>
      tpu.vector_store %arg10[%c0_50, %c0_51], %107 {strides = array<i32>} : memref<8x16xf32, #tpu.memory_space<vmem>>, vector<8x16xf32>,
      %c0_52 = arith.constant 0 : index
      %c0_53 = arith.constant 0 : index
      %109 = vector.load %arg11[%c0_52, %c0_53] : memref<8x1xf32, #tpu.memory_space<vmem>>, vector<8x1xf32>
      tpu.vector_store %arg11[%c0_52, %c0_53], %92 {strides = array<i32>} : memref<8x1xf32, #tpu.memory_space<vmem>>, vector<8x1xf32>,
    } else {
    }
    %c2_i32 = arith.constant 2 : i32
    %88 = arith.cmpi eq, %arg1, %c2_i32 : i32
    %89 = arith.extui %88 : i1 to i32
    %c0_i32_39 = arith.constant 0 : i32
    %90 = arith.cmpi ne, %89, %c0_i32_39 : i32
    scf.if %90 {
      %c0_40 = arith.constant 0 : index
      %c0_41 = arith.constant 0 : index
      %91 = vector.load %arg10[%c0_40, %c0_41] : memref<8x16xf32, #tpu.memory_space<vmem>>, vector<8x16xf32>
      %c0_42 = arith.constant 0 : index
      %c0_43 = arith.constant 0 : index
      %92 = vector.load %arg12[%c0_42, %c0_43] : memref<8x1xf32, #tpu.memory_space<vmem>>, vector<8x1xf32>
      %93 = tpu.reciprocal %92 : vector<8x1xf32> -> vector<8x1xf32>
      %94 = vector.broadcast %93 : vector<8x1xf32> to vector<8x16xf32>
      %95 = arith.mulf %91, %94 : vector<8x16xf32>
      %c0_44 = arith.constant 0 : index
      %c0_45 = arith.constant 0 : index
      %96 = vector.load %arg10[%c0_44, %c0_45] : memref<8x16xf32, #tpu.memory_space<vmem>>, vector<8x16xf32>
      tpu.vector_store %arg10[%c0_44, %c0_45], %95 {strides = array<i32>} : memref<8x16xf32, #tpu.memory_space<vmem>>, vector<8x16xf32>,
    } else {
    }
    return
  }
  func.func @transform_0(%arg0: i32, %arg1: i32) -> (i32, i32, i32) {
    %c0_i32 = arith.constant 0 : i32
    %c0_i32_0 = arith.constant 0 : i32
    return %arg1, %arg0, %c0_i32 : i32, i32, i32
  }
  func.func @transform_1(%arg0: i32, %arg1: i32) -> (i32, i32, i32) {
    %c0_i32 = arith.constant 0 : i32
    %c0_i32_0 = arith.constant 0 : i32
    %c0_i32_1 = arith.constant 0 : i32
    return %arg1, %c0_i32, %c0_i32_0 : i32, i32, i32
  }
  func.func @transform_2(%arg0: i32, %arg1: i32) -> (i32, i32, i32) {
    %c0_i32 = arith.constant 0 : i32
    %c0_i32_0 = arith.constant 0 : i32
    %c0_i32_1 = arith.constant 0 : i32
    return %arg1, %c0_i32, %c0_i32_0 : i32, i32, i32
  }
  func.func @transform_3(%arg0: i32, %arg1: i32) -> (i32, i32, i32) {
    %c0_i32 = arith.constant 0 : i32
    %c0_i32_0 = arith.constant 0 : i32
    return %arg1, %arg0, %c0_i32 : i32, i32, i32
  }
  func.func @transform_4(%arg0: i32, %arg1: i32) -> (i32, i32, i32) {
    %c0_i32 = arith.constant 0 : i32
    %c0_i32_0 = arith.constant 0 : i32
    %c0_i32_1 = arith.constant 0 : i32
    return %arg1, %c0_i32, %c0_i32_0 : i32, i32, i32
  }
  func.func @transform_5(%arg0: i32, %arg1: i32) -> (i32, i32) {
    %c0_i32 = arith.constant 0 : i32
    %c0_i32_0 = arith.constant 0 : i32
    %c0_i32_1 = arith.constant 0 : i32
    return %c0_i32, %c0_i32_0 : i32, i32
  }
  func.func @transform_6(%arg0: i32, %arg1: i32) -> (i32, i32) {
    %c0_i32 = arith.constant 0 : i32
    %c0_i32_0 = arith.constant 0 : i32
    %c0_i32_1 = arith.constant 0 : i32
    return %c0_i32, %c0_i32_0 : i32, i32
  }
  func.func @transform_7(%arg0: i32, %arg1: i32) -> (i32, i32) {
    %c0_i32 = arith.constant 0 : i32
    %c0_i32_0 = arith.constant 0 : i32
    %c0_i32_1 = arith.constant 0 : i32
    return %c0_i32, %c0_i32_0 : i32, i32
  }
  func.func @transform_8(%arg0: i32, %arg1: i32) -> (i32, i32) {
    %c0_i32 = arith.constant 0 : i32
    %c0_i32_0 = arith.constant 0 : i32
    return %arg0, %c0_i32 : i32, i32
  }
}

</mosaic_0001>

<bundles_post_ra>
// kernel: tpu_custom_call.1
= control target key start
LH: loop header
LB: loop body
LE: loop exit
PB: predicated region body
PF: predicated region fallthrough
CT: control target
= control target key end

     0   :  { %s1163_s27 = smov 0   ;;  %s1165_s28 = smov 0   ;;  %s1280_s0 = inlined_call_operand.vmem [shape: s8[3,24,24], index: 0, kind: input, shape index: {}]   ;;  %s1281_s1 = inlined_call_operand.vmem [shape: f32[3,24,16], index: 1, kind: input, shape index: {}]   ;;  %s1282_s2 = inlined_call_operand.vmem [shape: f32[3,2,24], index: 2, kind: input, shape index: {}]   ;;  %s1283_s3 = inlined_call_operand.vmem [shape: f32[3,24,2], index: 3, kind: input, shape index: {}]   ;;  %s1284_s4 = inlined_call_operand.vmem [shape: f32[3,1,16], index: 4, kind: input, shape index: {}]   ;;  %s1285_s5 = inlined_call_operand.vmem [shape: f32[16,64], index: 5, kind: input, shape index: {}]   ;;  %s1286_s6 = inlined_call_operand.vmem [shape: f32[1,64], index: 6, kind: input, shape index: {}]   ;;  %s1287_s7 = inlined_call_operand.vmem [shape: f32[1,64], index: 7, kind: input, shape index: {}]   ;;  %s1288_s8 = inlined_call_operand.vmem [shape: f32[24,16], index: 8, kind: output, shape index: {}]  }
   0x1   :  { %s1167_s29 = smov 0   ;;  %s1169_s30 = smov 0  }
   0x2   :  { %s1171_s9 = smov 0  }
   0x3 LB: > { %s27_s10 = sadd.s32 1, %s1098_s29  ;;  %s30_s11 = sadd.s32 1, %s1102_s30  ;;  %s1106_s9 = sphi %s1171_s9, %s18_s9   ;;  %s1102_s30 = sphi %s1169_s30, %s1294_s30   ;;  %s1098_s29 = sphi %s1167_s29, %s1293_s29   ;;  %s1094_s28 = sphi %s1165_s28, %s1292_s28   ;;  %s1090_s27 = sphi %s1163_s27, %s1291_s27  }
   0x4   : > { %p28_p0 = scmp.ge.s32.totalorder %s27_s10, 3  ;;  %p925_p1 = scmp.ge.s32.totalorder %s1106_s9, 1 }
   0x5   : > { %p321_p2 = scmp.lt.s32.totalorder %s1106_s9, 10 }
   0x6   : > { %s1296_s10 = smov (%p28_p0, %s27_s10), 0  ;;  %s1298_s11 = smov (!%p28_p0, %s30_s11), %s1102_s30 }
   0x7   : > { %p322_p3 = pnand %p925_p1, %p321_p2  ;;  %p32_p4 = scmp.ge.s32.totalorder %s1298_s11, 3 }
   0x8   : > { %p377_p5 = scmp.lt.s32.totalorder (!%p322_p3), %s1090_s27, 2  ;;  %p379_p6 = scmp.lt.s32.totalorder (!%p322_p3), %s1094_s28, 2  ;;  %v1108_v0 = vmov (!%p322_p3), 1   ;;  %v1109_v3 = vmov (!%p322_p3), 0   ;;  %v424_v6 = vlaneseq (!%p322_p3)  ;;  %vm436_vm3 = vcmask (!%p322_p3), 195584   ;;  %v649_v48 = vld [vmem:[%s1285_s5] sm:$0xff] (!%p322_p3) }
   0x9   : > { %s1300_s11 = smov (%p32_p4, %s1298_s11), 0  ;;  %325 = sbr.rel (%p322_p3) target bundleno = 1342 (0x53e), region = 52 }
   0xa   : > { %1289 = sst [smem:[#allocation4_spill]] %s1300_s11  ;;  %1040 = vset.pattern.permute.xlu0 (!%p322_p3), %v1108_v0  ;;  %v425_v7 = vshrl.u32 (!%p322_p3), %v424_v6, 7  ;;  %v1111_v29 = vmov (!%p322_p3), 0.0|0.0   ;;  %vm1112_vm5 = vmmov (!%p322_p3), 0   ;;  %v1113_v31 = vmov (!%p322_p3), 0.0   ;;  %v650_v49 = vld [vmem:[%s1285_s5 + $0x8] sm:$0xff] (!%p322_p3) }
   0xb   : > { %982 = vmatprep.subr.bf16.mxu1 (!%p322_p3), %v1111_v29  ;;  %979 = vmatprep.subr.bf16.mxu0 (!%p322_p3), %v1111_v29  ;;  %v986_v50 = vpack.c.bf16 (!%p322_p3), %v650_v49, %v649_v48  ;;  %s1114_s24 = smov (!%p322_p3), 8   ;;  %vm634_vm6 = vcmask (!%p322_p3), 64512   ;;  %vm658_vm7 = vcmask (!%p322_p3), 130048   ;;  %vm741_vm9 = vcmask (!%p322_p3), 523264   ;;  %p938_p7 = scmp.ne.s32.totalorder (!%p322_p3), %s1090_s27, 0 }
   0xc   : > { %v527_v8 = vsub.s32 (!%p322_p3), 1, %v425_v7  ;;  %v426_v11 = vsub.s32 (!%p322_p3), 0, %v425_v7  ;;  %969 = vmatprep.mubr.msk.f32.mxu1 (!%p322_p3), %vm1112_vm5, %v1113_v31  ;;  %960 = vmatprep.mubr.msk.f32.mxu0 (!%p322_p3), %vm1112_vm5, %v1113_v31 }
  0x10   : > { %s1197_s12 = scalar_select %p377_p5, %s1090_s27, 2 }
  0x11   : > { %s1302_s28 = smov (!%p379_p6, %s1094_s28), 2  ;;  %vm749_vm10 = vcmask (!%p938_p7), 7168  }
  0x12   : > { %s988_s13 = smul.u32 3, %s1197_s12  ;;  %s930_s14 = sshll.u32 %s1302_s28, 3 }
  0x13   : > { %s1203_s18 = scalar_lea.vmem %s1288_s8, %s930_s14  ;;  %s989_s11 = smul.u32 24, %s1197_s12 }
  0x14   : > { %s382_s15 = sadd.s32 %s988_s13, %s1302_s28  ;;  %s928_s16 = sshll.u32 %s1197_s12, 1 }
  0x15   : > { %s929_s19 = sshll.u32 %s382_s15, 3  ;;  %s926_s20 = sshll.u32 %s382_s15, 1 }
  0x16   : > { %s401_s23 = scalar_lea.vmem %s1283_s3, %s929_s19  ;;  %s384_s26 = scalar_lea.vmem %s1280_s0, %s926_s20 }
  0x17   : > { %v417_v1 = vld [vmem:[%s401_s23] sm:$0xff]  ;;  %s1215_s14 = scalar_lea.vmem %s1281_s1, %s989_s11  ;;  %s1110_s15 = smov 120  }
  0x18   : > { %v411_v2 = vld [vmem:[%s384_s26] sm:$0x3]  ;;  %522 = vperm.xlu0 %1040, %v417_v1   ;;  %v415_v5 = vld [vmem:[%s1215_s14 + $0x10] sm:$0xff]  ;;  %s393_s20 = scalar_lea.vmem %s1282_s2, %s928_s16  ;;  %v414_v27 = vld [vmem:[%s1215_s14 + $0x8] sm:$0xff]  ;;  %s404_s28 = scalar_lea.vmem %s1284_s4, %s1197_s12 }
  0x19   : > { %vm412_vm0 = vnez %v411_v2  ;;  %v416_v9 = vld [vmem:[%s393_s20] sm:$0x3] }
  0x1a   : > { %v432_v4 = vsel %vm412_vm0, 16843009, %v1109_v3  ;;  %v528_v10 = vrot.slane %v416_v9, %v527_v8  ;;  %v427_v15 = vrot.slane %v416_v9, %v426_v11  ;;  %v413_v26 = vld [vmem:[%s1215_s14] sm:$0xff] }
  0x1b   : > { %v433_v12 = vunpack.c.0.s8 %v432_v4  ;;  %v1042_v28 = vpack.i.bf16 %v414_v27, %v413_v26  ;;  %v980_v30 = vpack.c.bf16 %v414_v27, %v413_v26  ;;  %v933_v60 = vld [vmem:[%s404_s28] ss:$0 sm:$0xff] }
  0x1c   : > { %1041 = vset.pattern.permute.xlu0 %v1109_v3  ;;  %v937_v9 = vld [vmem:[%s1287_s7] ss:$0 sm:$0xff] }
  0x1d   : > { %421 = vperm.xlu0 %1041, %v417_v1   ;;  %vm434_vm1 = vcmp.ne.s32.totalorder %v433_v12, 0  ;;  %981 = vmatpush3.bf16.msra.mxu0 %v980_v30 }
  0x1e   : > { %958 = vmatprep.subr.mxu0 %v1113_v31 }
  0x21   : > { %551 = vrot.lane.b32.xlu0 %v415_v5, %s1110_s15  ;;  %959 = vmatpush3.msra.mxu0 %v415_v5  ;;  %v935_v5 = vld [vmem:[%s1286_s6] ss:$0 sm:$0xff] }
  0x22   : > { %1047 = vset.pattern.permute.xlu0 %v1108_v0  ;;  %985 = vmatprep.subr.bf16.mxu0 %v1111_v29 }
  0x97   : > { %v523_v13 = vpop.permute.xlu0 %522 }
  0x98   : > { %v529_v14 = vadd.f32 %v528_v10, %v523_v13 }
  0x9a   : > { %v531_v16 = vmul.f32 0.2, %v529_v14  ;;  %vm530_vm2 = vcmp.ge.f32.partialorder %v529_v14, 0.0 }
  0x9c   : > { %v422_v17 = vpop.permute.xlu0 %421  ;;  %v532_v18 = vsel %vm530_vm2, %v529_v14, %v531_v16  ;;  %v1115_v14 = vmov (!%p938_p7), 1.0  }
  0x9d   : > { %v428_v19 = vadd.f32 %v427_v15, %v422_v17  ;;  %v533_v20 = vsel %vm434_vm1, %v532_v18, -1e+09  ;;  %751 = vst.msk [vmem:[#allocation3] sm:$0xff] (!%p938_p7), %vm749_vm10, %v1115_v14 }
  0x9e   : > { %v534_v21 = vsel %vm436_vm3, %v533_v20, -inf }
  0x9f   : > { %v430_v22 = vmul.f32 0.2, %v428_v19  ;;  %535 = vmax.xlane.f32.xlu1 %v534_v21  ;;  %vm429_vm4 = vcmp.ge.f32.partialorder %v428_v19, 0.0 }
  0xa0   : > { %v552_v32 = vpop.permute.xlu0 %551 }
  0xa1   : > { %v431_v23 = vsel %vm429_vm4, %v428_v19, %v430_v22 }
  0xa2   : > { %v435_v24 = vsel %vm434_vm1, %v431_v23, -1e+09 }
  0xa3   : > { %v437_v25 = vsel %vm436_vm3, %v435_v24, -inf }
  0xa4   : > { %438 = vmax.xlane.f32.xlu0 %v437_v25 }
  0xb0   : > { %1043 = vrot.lane.b32.xlu1 %v1042_v28, %s1110_s15 }
 0x12c   : > { %v536_v33 = vpop.xlane.xlu1 %535 }
 0x12d   : > { %v537_v34 = vsub.f32 %v533_v20, %v536_v33 }
 0x12f   : > { %v538_v35 = vmul.f32 1.442695, %v537_v34 }
 0x130   : > { %v1044_v36 = vpop.permute.xlu1 %1043 }
 0x131   : > { %1048 = vpow2.f32 %v538_v35  ;;  %v439_v37 = vpop.xlane.xlu0 %438  ;;  %v1046_v38 = vunpack.i.h.bf16 %v1044_v36  ;;  %v1045_v39 = vunpack.i.l.bf16 %v1044_v36 }
 0x132   : > { %v440_v40 = vsub.f32 %v435_v24, %v439_v37 }
 0x133   : > { %v983_v41 = vpack.c.bf16 %v1046_v38, %v1045_v39 }
 0x134   : > { %v441_v42 = vmul.f32 1.442695, %v440_v40 }
 0x135   : > { %984 = vmatpush3.bf16.msra.mxu1 %v983_v41 }
 0x136   : > { %1050 = vpow2.f32 %v441_v42  ;;  %967 = vmatprep.subr.mxu1 %v1113_v31 }
 0x139   : > { %968 = vmatpush3.msra.mxu1 %v552_v32 }
 0x13b   : > { %v1049_v43 = vpop.eup %1048 }
 0x13c   : > { %970 = vmatmul.mubr.msk.f32.vlgmr.msra.gmra.mrb[0].mxu1 %vm436_vm3, %v1049_v43  ;;  %v540_v44 = vsel %vm436_vm3, %v1049_v43, 0.0 }
 0x13d   : > { %541 = vadd.xlane.f32.xlu1 %v540_v44 }
 0x140   : > { %v1051_v45 = vpop.eup %1050 }
 0x141   : > { %961 = vmatmul.mubr.msk.f32.vlgmr.msra.gmra.mrb[0].mxu0 %vm436_vm3, %v1051_v45  ;;  %v443_v46 = vsel %vm436_vm3, %v1051_v45, 0.0 }
 0x142   : > { %444 = vadd.xlane.f32.xlu0 %v443_v46  ;;  %976 = vmatprep.mubr.msk.f32.mxu0 %vm1112_vm5, %v1113_v31 }
 0x143   : > { %987 = vmatpush3.bf16.msra.mxu0 %v986_v50 }
 0x1ca   : > { %v542_v47 = vpop.xlane.xlu1 %541 }
 0x1cb   : > { %1052 = vrcp.f32 %v542_v47 }
 0x1cf   : > { %v445_v57 = vpop.xlane.xlu0 %444 }
 0x1d0   : > { %1054 = vrcp.f32 %v445_v57 }
 0x1d5   : > { %v1053_v51 = vpop.eup %1052 }
 0x1da   : > { %v1055_v58 = vpop.eup %1054 }
 0x20f   : > { %v625_v52 = vpop.f32.mrb[0].mxu1 }
 0x210   : > { %v629_v53 = vmul.f32 %v1053_v51, %v625_v52  ;;  %v971_v54 = vpop.f32.mrb[1].mxu1 }
 0x212   : > { %631 = vrot.lane.b32.xlu0 %v629_v53, %s1114_s24 }
 0x214   : > { %v516_v55 = vpop.f32.mrb[0].mxu0 }
 0x215   : > { %v962_v56 = vpop.f32.mrb[1].mxu0  ;;  %v520_v59 = vmul.f32 %v1055_v58, %v516_v55 }
 0x284   : > { %v632_v61 = vpop.permute.xlu0 %631 }
 0x285   : > { %v635_v62 = vsel %vm634_vm6, %v520_v59, %v632_v61 }
 0x286   : > { %v642_v63 = vadd.f32 %v933_v60, %v635_v62 }
 0x288   : > { %v644_v0 = vmin.f32 %v642_v63, 0.0  ;;  %vm643_vm8 = vcmp.gt.f32.partialorder %v642_v63, 0.0 }
 0x28a   : > { %v645_v1 = vmul.f32 1.442695, %v644_v0 }
 0x28c   : > { %1056 = vpow2.f32 %v645_v1 }
 0x296   : > { %v1057_v2 = vpop.eup %1056 }
 0x297   : > { %v934_v3 = vadd.f32 -1.0, %v1057_v2 }
 0x299   : > { %v648_v4 = vsel %vm643_vm8, %v642_v63, %v934_v3 }
 0x29a   : > { %977 = vmatmul.mubr.msk.f32.vlgmr.msra.gmra.mrb[2].mxu0 %vm658_vm7, %v648_v4  ;;  %752 = vst.msk [vmem:[%s1203_s18] sm:$0xff] (!%p938_p7), %vm658_vm7, %v648_v4 }
 0x36d   : > { %v728_v6 = vpop.f32.mrb[2].mxu0 }
 0x36e   : > { %v729_v7 = vadd.f32 %v935_v5, %v728_v6  ;;  %v978_v8 = vpop.f32.mrb[3].mxu0 }
 0x370   : > { %1058 = vtanh.f32 %v729_v7 }
 0x37a   : > { %v1059_v10 = vpop.eup %1058 }
 0x37b   : > { %v740_v11 = vmul.f32 %v1059_v10, %v937_v9 }
 0x37d   : > { %v742_v12 = vsel %vm741_vm9, %v740_v11, 0.0 }
 0x37e   : > { %743 = vadd.xlane.f32.xlu1 %v742_v12 }
 0x405   : > { %748 = sbr.rel (%p938_p7) target bundleno = 1037 (0x40d), region = 56 }
 0x40b   : > { %v744_v13 = vpop.xlane.xlu1 %743 }
 0x40c   : > { %750 = vst.msk [vmem:[#allocation2] sm:$0xff] %vm749_vm10, %v744_v13 }
 0x40d PF: > { %p939_p8 = scmp.le.s32.totalorder %s1090_s27, 0 }
 0x40e   : > { %vm768_vm11 = vcmask (!%p939_p8), 7168   ;;  %v1116_v16 = vmov (!%p939_p8), 0   ;;  %v765_v22 = vld [vmem:[#allocation3] sm:$0xff] (!%p939_p8)  ;;  %v770_v28 = vld [vmem:[%s1203_s18] sm:$0xff] (!%p939_p8) }
 0x40f   : > { %756 = sbr.rel (%p939_p8) target bundleno = 1198 (0x4ae), region = 60  ;;  %1060 = vset.pattern.permute.xlu0 (!%p939_p8), %v1116_v16 }
 0x413   : > { %v757_v15 = vld [vmem:[#allocation2] sm:$0xff] (!%p939_p8) }
 0x414   : > { %v758_v17 = vmax.f32 (!%p939_p8), %v757_v15, %v744_v13 }
 0x416   : > { %v759_v18 = vsub.f32 %v757_v15, %v758_v17  ;;  %v762_v19 = vsub.f32 %v744_v13, %v758_v17  ;;  %785 = vst.msk [vmem:[#allocation2] sm:$0xff] %vm768_vm11, %v758_v17 }
 0x418   : > { %v760_v20 = vmul.f32 1.442695, %v759_v18  ;;  %v763_v21 = vmul.f32 1.442695, %v762_v19 }
 0x41a   : > { %1061 = vpow2.f32 %v760_v20 }
 0x41b   : > { %1063 = vpow2.f32 %v763_v21 }
 0x424   : > { %v1062_v23 = vpop.eup %1061 }
 0x425   : > { %773 = vperm.xlu0 %1060, %v1062_v23   ;;  %v766_v24 = vmul.f32 %v1062_v23, %v765_v22  ;;  %v1064_v25 = vpop.eup %1063 }
 0x427   : > { %v767_v26 = vadd.f32 %v1064_v25, %v766_v24 }
 0x429   : > { %769 = vst.msk [vmem:[#allocation3] sm:$0xff] %vm768_vm11, %v767_v26  ;;  %779 = vperm.xlu0 %1060, %v1064_v25  }
 0x4a4   : > { %v774_v27 = vpop.permute.xlu0 %773 }
 0x4a5   : > { %v776_v30 = vmul.f32 %v774_v27, %v770_v28 }
 0x4a8   : > { %v780_v29 = vpop.permute.xlu0 %779 }
 0x4a9   : > { %v782_v31 = vmul.f32 %v780_v29, %v648_v4 }
 0x4ab   : > { %v783_v32 = vadd.f32 %v782_v31, %v776_v30 }
 0x4ad   : > { %784 = vst.msk [vmem:[%s1203_s18] sm:$0xff] %vm658_vm7, %v783_v32 }
 0x4ae PF: > { %p940_p9 = scmp.ne.s32.totalorder %s1090_s27, 2 }
 0x4af   : > { %v791_v33 = vld [vmem:[#allocation3] sm:$0xff] (!%p940_p9)  ;;  %v1117_v34 = vmov (!%p940_p9), 0  }
 0x4b0   : > { %789 = sbr.rel (%p940_p9) target bundleno = 1342 (0x53e), region = 64  ;;  %1065 = vset.pattern.permute.xlu0 (!%p940_p9), %v1117_v34  ;;  %1066 = vrcp.f32 (!%p940_p9), %v791_v33 }
 0x4b4   : > { %v790_v36 = vld [vmem:[%s1203_s18] sm:$0xff] (!%p940_p9) }
 0x4ba   : > { %v1067_v35 = vpop.eup %1066 }
 0x4bb   : > { %795 = vperm.xlu0 %1065, %v1067_v35  }
 0x53a   : > { %v796_v37 = vpop.permute.xlu0 %795 }
 0x53b   : > { %v798_v38 = vmul.f32 %v796_v37, %v790_v36 }
 0x53d   : > { %799 = vst.msk [vmem:[%s1203_s18] sm:$0xff] %vm658_vm7, %v798_v38 }
 0x53e PF: > { %s18_s9 = sadd.s32 1, %s1106_s9   ;;  %s1290_s16 = sld [smem:[#allocation4_spill]] }
 0x53f   : > { %p15_p10 = scmp.ge.s32.totalorder %s18_s9, 11   ;;  %s1291_s27 = smov %s1098_s29 }
 0x540   : > { %s1292_s28 = smov %s1102_s30  ;;  %s1293_s29 = smov %s1296_s10 }
 0x541   :  { %17 = sbr.rel (!%p15_p10) target bundleno = 3 (0x3), region = 106 }
 0x544   : > { %s1294_s30 = smov %s1290_s16 }

</bundles_post_ra>
